<compile_context>
chip_gen: v6e
topology: v6e:2x2x1
jax: 0.10.0
libtpu: 0.0.40
codegen_flags: <defaults>
</compile_context>

<pallas_src>
import random

import numpy as np
import jax
import jax.numpy as jnp
from jax.experimental import pallas as pl
from jax.experimental.pallas import tpu as pltpu


_VMEM = pl.BlockSpec(memory_space=pltpu.MemorySpace.VMEM)


def _nbytes(shape, dtype):
    return int(np.prod(shape)) * np.dtype(dtype).itemsize


def _arr_bytes(x):
    return int(np.prod(x.shape)) * np.dtype(x.dtype).itemsize


def _pick_tile(n, unit, max_tile):
    """Largest divisor of n that is a multiple of `unit` and <= max_tile, else n (full)."""
    t = max_tile
    while t >= unit:
        if n % t == 0:
            return t
        t -= unit
    return n


# ----------------------------------------------------------------------------
# Pallas kernels
# ----------------------------------------------------------------------------
def _enc_att_kernel(enc_ref, w_ea_ref, b_ea_ref, out_ref):
    out = jnp.dot(enc_ref[...], w_ea_ref[...],
                  preferred_element_type=jnp.float32) + b_ea_ref[...]
    out_ref[...] = out.astype(out_ref.dtype)


def _init_state_kernel(enc_ref, w_h_ref, b_h_ref, w_c_ref, b_c_ref, h_ref, c_ref):
    enc = enc_ref[...]                                           # (Bb, P, E) bf16
    bb, p, _ = enc.shape
    # mean over pixels as an MXU reduction (no f32 copy of enc)
    ones = jnp.full((bb, 1, p), 1.0, dtype=jnp.bfloat16)
    s = jnp.einsum('bqp,bpe->bqe', ones, enc,
                   preferred_element_type=jnp.float32)           # (Bb, 1, E)
    mean_b = (s[:, 0, :] * (1.0 / p)).astype(jnp.bfloat16)       # (Bb, E)
    h_ref[...] = jnp.dot(mean_b, w_h_ref[...],
                         preferred_element_type=jnp.float32) + b_h_ref[...]
    c_ref[...] = jnp.dot(mean_b, w_c_ref[...],
                         preferred_element_type=jnp.float32) + b_c_ref[...]


def _step_kernel(tf_ref, stop_ref,                               # scalar-prefetch (SMEM)
                 emb_ref,                                        # (1, B, Dm) per-step block
                 enc_ref, enc_att_ref, h0_ref, c0_ref,           # VMEM-resident
                 w_da_ref, b_da_ref, w_a_ref, b_a_ref,
                 w_beta_ref, b_beta_ref,
                 w_ihx_ref, w_ihz_ref, b_ih_ref, w_hh_ref, b_hh_ref,
                 alpha_out_ref, h_out_ref,
                 h_s, c_s):
    t = pl.program_id(0)

    @pl.when(t == 0)
    def _():
        h_s[...] = h0_ref[...]
        c_s[...] = c0_ref[...]

    h = h_s[...]                                                 # (B, D) f32
    c = c_s[...]
    B, D = h.shape

    # teacher-forcing select.  NOTE: the reference module feeds h itself as the LSTM input
    # on the non-teacher-forcing branch (requires embed_dim == decoder_dim) -- kept as-is.
    tf_f = tf_ref[t].astype(jnp.float32)
    x = tf_f * emb_ref[0].astype(jnp.float32) + (1.0 - tf_f) * h

    h_b = h.astype(jnp.bfloat16)
    x_b = x.astype(jnp.bfloat16)
    enc = enc_ref[...]                                           # (B, P, E) bf16

    # ---- Attention (enc_att precomputed; scores kept bf16, A-contraction on the MXU) ----
    dec_att = jnp.dot(h_b, w_da_ref[...],
                      preferred_element_type=jnp.float32) + b_da_ref[...]       # (B, A) f32
    att = jnp.maximum(enc_att_ref[...] + dec_att.astype(jnp.bfloat16)[:, None, :], 0)
    # TODO(synk): at very large P chunk this (B, P, A) bf16 temp over P with lax.fori_loop.
    A = w_a_ref.shape[1]
    w_a_row = jnp.broadcast_to(w_a_ref[...][None], (B, 1, A))                   # (B, 1, A)
    e = jnp.einsum('bqa,bpa->bqp', w_a_row, att,
                   preferred_element_type=jnp.float32)[:, 0, :] + b_a_ref[...]  # (B, P)

    # softmax over pixels (exact denominator so alphas sum to 1)
    e_max = jnp.max(e, axis=1, keepdims=True)
    p_un = jnp.exp(e - e_max)
    alpha = p_un / jnp.sum(p_un, axis=1, keepdims=True)                         # (B, P) f32

    # attention-weighted sum as a batched MXU matvec (no (B, P, E) broadcast temp)
    z = jnp.einsum('bqp,bpe->bqe', alpha[:, None, :].astype(jnp.bfloat16), enc,
                   preferred_element_type=jnp.float32)[:, 0, :]                 # (B, E) f32

    # ---- beta gate ----
    beta = jax.nn.sigmoid(jnp.dot(h_b, w_beta_ref[...],
                                  preferred_element_type=jnp.float32) + b_beta_ref[...])
    z = beta * z

    # ---- LSTMCell (split input matmuls instead of lane-axis concat; gate order i,f,g,o) ----
    gates = (jnp.dot(x_b, w_ihx_ref[...], preferred_element_type=jnp.float32)
             + jnp.dot(z.astype(jnp.bfloat16), w_ihz_ref[...],
                       preferred_element_type=jnp.float32)
             + b_ih_ref[...]
             + jnp.dot(h_b, w_hh_ref[...], preferred_element_type=jnp.float32)
             + b_hh_ref[...])                                                   # (B, 4D) f32
    i_g = jax.nn.sigmoid(gates[:, 0 * D:1 * D])
    f_g = jax.nn.sigmoid(gates[:, 1 * D:2 * D])
    g_g = jnp.tanh(gates[:, 2 * D:3 * D])
    o_g = jax.nn.sigmoid(gates[:, 3 * D:4 * D])
    c_new = f_g * c + i_g * g_g
    h_new = o_g * jnp.tanh(c_new)

    # ---- fixed-B masking of the batch truncation (rows >= stop keep their frozen state) ----
    stop = stop_ref[t]
    row = jax.lax.broadcasted_iota(jnp.int32, (B, 1), 0)
    active = (row < stop).astype(jnp.float32)                                   # (B, 1)
    h_upd = active * h_new + (1.0 - active) * h
    c_upd = active * c_new + (1.0 - active) * c
    h_s[...] = h_upd
    c_s[...] = c_upd

    alpha_out_ref[0] = active * alpha
    h_out_ref[0] = h_upd.astype(h_out_ref.dtype)                                # bf16


def _fc_kernel(h_ref, m_ref, w_ref, b_ref, out_ref):
    # TODO(synk): dropout treated as identity (eval mode); training-mode dropout would use
    # pltpu.prng_seed / pltpu.prng_random_bits.
    logits = jnp.dot(h_ref[...], w_ref[...],
                     preferred_element_type=jnp.float32) + b_ref[...]
    out_ref[...] = logits * m_ref[...]          # fused validity mask (zero past decode len)


# ----------------------------------------------------------------------------
# Wrappers calling pallas_call
# ----------------------------------------------------------------------------
def compute_enc_att(params, enc2d, vmem_limit):
    M, E = enc2d.shape
    A = params['w_ea'].shape[1]
    rm = _pick_tile(M, 8, 512)
    return pl.pallas_call(
        _enc_att_kernel,
        grid=(M // rm,),
        in_specs=[pl.BlockSpec((rm, E), lambda i: (i, 0)), _VMEM, _VMEM],
        out_specs=pl.BlockSpec((rm, A), lambda i: (i, 0)),
        out_shape=jax.ShapeDtypeStruct((M, A), jnp.bfloat16),
        compiler_params=pltpu.CompilerParams(
            dimension_semantics=("parallel",), vmem_limit_bytes=vmem_limit),
    )(enc2d, params['w_ea'], params['b_ea'])


def compute_init_state(params, enc, vmem_limit):
    B, P, E = enc.shape
    D = params['w_init_h'].shape[1]
    bb = 8 if B % 8 == 0 else B
    return pl.pallas_call(
        _init_state_kernel,
        grid=(B // bb,),
        in_specs=[pl.BlockSpec((bb, P, E), lambda i: (i, 0, 0)),
                  _VMEM, _VMEM, _VMEM, _VMEM],
        out_specs=(pl.BlockSpec((bb, D), lambda i: (i, 0)),
                   pl.BlockSpec((bb, D), lambda i: (i, 0))),
        out_shape=(jax.ShapeDtypeStruct((B, D), jnp.float32),
                   jax.ShapeDtypeStruct((B, D), jnp.float32)),
        compiler_params=pltpu.CompilerParams(
            dimension_semantics=("parallel",), vmem_limit_bytes=vmem_limit),
    )(enc, params['w_init_h'], params['b_init_h'],
      params['w_init_c'], params['b_init_c'])


def run_steps(params, tf_flags, stop_idx, emb_t, enc, enc_att, h0, c0, vmem_limit):
    T, B, Dm = emb_t.shape
    _, P, _ = enc.shape
    D = h0.shape[1]

    step3 = lambda t, tf, si: (t, 0, 0)

    # emb_t is windowed per timestep; everything else is a single VMEM-resident copy
    # (no double-buffering of the large constant operands -> halves the resident footprint).
    in_specs = [pl.BlockSpec((1, B, Dm), step3)] + [_VMEM] * 15
    out_specs = [pl.BlockSpec((1, B, P), step3),     # alphas_seq (f32)
                 pl.BlockSpec((1, B, D), step3)]     # h_seq (bf16)

    grid_spec = pltpu.PrefetchScalarGridSpec(
        num_scalar_prefetch=2, grid=(T,),
        in_specs=in_specs, out_specs=out_specs,
        scratch_shapes=[pltpu.VMEM((B, D), jnp.float32),    # h state
                        pltpu.VMEM((B, D), jnp.float32)])   # c state

    # TODO(synk): on v7x split the batch across the 2 TensorCores (leading 'parallel' grid
    # axis over batch halves with per-core h/c scratch) and cap vmem_limit at ~56 MiB.
    return pl.pallas_call(
        _step_kernel,
        out_shape=(jax.ShapeDtypeStruct((T, B, P), jnp.float32),
                   jax.ShapeDtypeStruct((T, B, D), jnp.bfloat16)),
        grid_spec=grid_spec,
        compiler_params=pltpu.CompilerParams(
            dimension_semantics=("arbitrary",), vmem_limit_bytes=vmem_limit),
    )(jnp.asarray(tf_flags, jnp.int32), jnp.asarray(stop_idx, jnp.int32),
      emb_t, enc, enc_att, h0, c0,
      params['w_da'], params['b_da'], params['w_a'], params['b_a'],
      params['w_beta'], params['b_beta'],
      params['w_ih_x'], params['w_ih_z'], params['b_ih'],
      params['w_hh'], params['b_hh'])


def fc_head(params, h_flat, mask_flat, vmem_limit):
    M, D = h_flat.shape
    V = params['w_fc'].shape[1]
    tm = _pick_tile(M, 8, 512)
    tv = _pick_tile(V, 128, 512)
    # grid order (V-blocks, M-blocks): M sweeps fastest so each w_fc block stays resident.
    return pl.pallas_call(
        _fc_kernel,
        grid=(V // tv, M // tm),
        in_specs=[pl.BlockSpec((tm, D), lambda j, i: (i, 0)),
                  pl.BlockSpec((tm, 1), lambda j, i: (i, 0)),
                  pl.BlockSpec((D, tv), lambda j, i: (0, j)),
                  pl.BlockSpec((1, tv), lambda j, i: (0, j))],
        out_specs=pl.BlockSpec((tm, tv), lambda j, i: (i, j)),
        out_shape=jax.ShapeDtypeStruct((M, V), jnp.float32),
        compiler_params=pltpu.CompilerParams(
            dimension_semantics=("parallel", "parallel"), vmem_limit_bytes=vmem_limit),
    )(h_flat, mask_flat, params['w_fc'], params['b_fc'])


# ----------------------------------------------------------------------------
# DecoderWithAttention forward (host glue mirrors the PyTorch forward)
# ----------------------------------------------------------------------------
def decoder_forward(params, encoder_out, encoded_captions, caption_lengths, tf_seed=0):
    B = encoder_out.shape[0]
    E = encoder_out.shape[-1]
    D = params['w_hh'].shape[0]
    Dm = params['embedding'].shape[1]
    A = params['w_ea'].shape[1]
    V = params['w_fc'].shape[1]
    assert Dm == D, "module requires embed_dim == decoder_dim"

    enc = encoder_out.reshape(B, -1, E).astype(jnp.bfloat16)     # (B, num_pixels, E)
    P = enc.shape[1]

    # sort by caption length, descending (host-side, like torch.sort)
    cap_len = np.asarray(caption_lengths).reshape(-1)
    sort_ind = np.argsort(-cap_len, kind='stable')
    cap_sorted = cap_len[sort_ind]
    enc = enc[jnp.asarray(sort_ind)]
    caps = encoded_captions[jnp.asarray(sort_ind)]

    # embedding lookup (glue)
    embeddings = params['embedding'][caps]                       # (B, L, Dm) bf16

    decode_lengths = [int(v) for v in (cap_sorted - 1)]
    T = int(max(decode_lengths))

    # ---- VMEM budget for the resident step-kernel working set ----
    resident = (_nbytes((B, P, E), jnp.bfloat16) + _nbytes((B, P, A), jnp.bfloat16)
                + 2 * _nbytes((B, D), jnp.float32)
                + sum(_arr_bytes(params[k]) for k in
                      ('w_da', 'b_da', 'w_a', 'b_a', 'w_beta', 'b_beta',
                       'w_ih_x', 'w_ih_z', 'b_ih', 'w_hh', 'b_hh')))
    temps = (4 * _nbytes((B, P, max(A, E)), jnp.bfloat16)
             + 8 * _nbytes((B, 4 * D), jnp.float32))
    # TODO(synk): cap at ~48-56 MiB when targeting v7x (64 MiB physical VMEM per core).
    step_vmem = int(min(100 * 2 ** 20, max(32 * 2 ** 20, 2 * (resident + temps))))
    small_vmem = 32 * 2 ** 20

    # time-invariant precompute (hoisted out of the recurrence)
    enc_att = compute_enc_att(params, enc.reshape(B * P, E), small_vmem).reshape(B, P, A)
    h0, c0 = compute_init_state(params, enc, small_vmem)

    # scalar schedule (teacher-forcing coin flips + per-step active-batch counts)
    rng = random.Random(tf_seed)                                 # deterministic teacher forcing
    tf_flags = np.array([1 if rng.random() < 0.7 else 0 for _ in range(T)], dtype=np.int32)
    stop_idx = np.array([sum(1 for l in decode_lengths if l >= s)
                         for s in range(1, T + 1)], dtype=np.int32)

    emb_t = jnp.transpose(embeddings[:, :T, :], (1, 0, 2))       # (T, B, Dm)

    # fused recurrent loop (single pallas_call; weights / enc / state VMEM-resident)
    alphas_seq, h_seq = run_steps(params, tf_flags, stop_idx, emb_t, enc, enc_att,
                                  h0, c0, step_vmem)

    # fc head hoisted out of the recurrence.  Transpose the SMALL bf16 h_seq (not the
    # logits) so the (B, T, V) prediction layout is a free reshape of the fc output, and
    # fuse the validity mask in-kernel (no extra pass over the logits).
    h_flat = jnp.transpose(h_seq, (1, 0, 2)).reshape(B * T, D)               # (B*T, D) bf16
    valid = (np.arange(T)[None, :] < np.array(decode_lengths)[:, None])      # (B, T)
    mask_flat = jnp.asarray(valid.reshape(B * T, 1).astype(np.float32))
    preds_flat = fc_head(params, h_flat, mask_flat, small_vmem)              # (B*T, V) f32
    predictions = preds_flat.reshape(B, T, V)

    alphas = jnp.transpose(alphas_seq, (1, 0, 2))                            # (B, T, P)

    return predictions, caps, decode_lengths, alphas, jnp.asarray(sort_ind)


# ----------------------------------------------------------------------------
# Deterministic parameter init (shapes from DecoderWithAttention.__init__)
# ----------------------------------------------------------------------------
def init_params(key, *, vocab_size, embed_dim, decoder_dim, attention_dim, encoder_dim):
    ks = jax.random.split(key, 20)

    def u(k, shape, s=0.1, dtype=jnp.bfloat16):
        return jax.random.uniform(k, shape, jnp.float32, -s, s).astype(dtype)

    p = {}
    p['embedding'] = u(ks[0], (vocab_size, embed_dim))
    # Attention
    p['w_ea'] = u(ks[1], (encoder_dim, attention_dim))
    p['b_ea'] = u(ks[2], (1, attention_dim), dtype=jnp.float32)
    p['w_da'] = u(ks[3], (decoder_dim, attention_dim))
    p['b_da'] = u(ks[4], (1, attention_dim), dtype=jnp.float32)
    p['w_a'] = u(ks[5], (1, attention_dim))              # atten_layer weight stored as a row
    p['b_a'] = u(ks[6], (1, 1), dtype=jnp.float32)
    # beta gate (embed_dim -> encoder_dim; module requires embed_dim == decoder_dim)
    p['w_beta'] = u(ks[7], (embed_dim, encoder_dim))
    p['b_beta'] = u(ks[8], (1, encoder_dim), dtype=jnp.float32)
    # LSTMCell, input weights split into the embedding part and the attention-context part
    p['w_ih_x'] = u(ks[9], (decoder_dim, 4 * decoder_dim))
    p['w_ih_z'] = u(ks[10], (encoder_dim, 4 * decoder_dim))
    p['b_ih'] = u(ks[11], (1, 4 * decoder_dim), dtype=jnp.float32)
    p['w_hh'] = u(ks[12], (decoder_dim, 4 * decoder_dim))
    p['b_hh'] = u(ks[13], (1, 4 * decoder_dim), dtype=jnp.float32)
    # init_h / init_c
    p['w_init_h'] = u(ks[14], (encoder_dim, decoder_dim))
    p['b_init_h'] = u(ks[15], (1, decoder_dim), dtype=jnp.float32)
    p['w_init_c'] = u(ks[16], (encoder_dim, decoder_dim))
    p['b_init_c'] = u(ks[17], (1, decoder_dim), dtype=jnp.float32)
    # fc head (matches module: weight uniform(-0.1, 0.1), bias zeros)
    p['w_fc'] = u(ks[18], (decoder_dim, vocab_size))
    p['b_fc'] = jnp.zeros((1, vocab_size), jnp.float32)
    return p


# ----------------------------------------------------------------------------
# Example run
# ----------------------------------------------------------------------------
if __name__ == "__main__":
    B = 2
    ENC_IMG = 4              # -> num_pixels = 16
    ENCODER_DIM = 32         # (2048 in the real model)
    DECODER_DIM = 32
    ATTENTION_DIM = 32
    EMBED_DIM = 32           # must equal decoder_dim (module requirement)
    VOCAB = 64
    MAX_CAP_LEN = 8

    key = jax.random.PRNGKey(0)
    k_p, k_enc, k_cap = jax.random.split(key, 3)

    params = init_params(k_p, vocab_size=VOCAB, embed_dim=EMBED_DIM,
                         decoder_dim=DECODER_DIM, attention_dim=ATTENTION_DIM,
                         encoder_dim=ENCODER_DIM)

    encoder_out = jax.random.normal(k_enc, (B, ENC_IMG, ENC_IMG, ENCODER_DIM), jnp.float32)
    encoded_captions = jax.random.randint(k_cap, (B, MAX_CAP_LEN), 0, VOCAB, jnp.int32)
    caption_lengths = jnp.array([[7], [5]], jnp.int32)

    predictions, caps_sorted, decode_lengths, alphas, sort_ind = decoder_forward(
        params, encoder_out, encoded_captions, caption_lengths, tf_seed=0)

    jax.block_until_ready(predictions)
    jax.block_until_ready(alphas)

    T = max(decode_lengths)
    assert predictions.shape == (B, T, VOCAB)
    assert alphas.shape == (B, T, ENC_IMG * ENC_IMG)
    assert bool(jnp.all(jnp.isfinite(predictions)))
    assert bool(jnp.all(jnp.isfinite(alphas)))
    print("KERNEL_OK")
</pallas_src>

<mosaic_0001>
module attributes {stable_mosaic.version = 11 : i64} {
  func.func @_enc_att_kernel(%arg0: i32, %arg1: memref<32x32xbf16, #tpu.memory_space<vmem>>, %arg2: memref<32x32xbf16, #tpu.memory_space<vmem>>, %arg3: memref<1x32xf32, #tpu.memory_space<vmem>>, %arg4: memref<32x32xbf16, #tpu.memory_space<vmem>>) attributes {dimension_semantics = [#tpu.dimension_semantics<parallel>], iteration_bounds = array<i64: 1>, scalar_prefetch = 0 : i64, scratch_operands = 0 : i64, tpu.core_type = #tpu.core_type<tc>, window_params = [{transform_indices = @transform_0, window_bounds = array<i64: 32, 32>}, {pipeline_mode = #tpu.pipeline_mode<synchronous>, transform_indices = @transform_1, window_bounds = array<i64: 32, 32>}, {pipeline_mode = #tpu.pipeline_mode<synchronous>, transform_indices = @transform_2, window_bounds = array<i64: 1, 32>}, {transform_indices = @transform_3, window_bounds = array<i64: 32, 32>}]} {
    %c0 = arith.constant 0 : index
    %c0_0 = arith.constant 0 : index
    %0 = vector.load %arg1[%c0, %c0_0] : memref<32x32xbf16, #tpu.memory_space<vmem>>, vector<32x32xbf16>
    %c0_1 = arith.constant 0 : index
    %c0_2 = arith.constant 0 : index
    %1 = vector.load %arg2[%c0_1, %c0_2] : memref<32x32xbf16, #tpu.memory_space<vmem>>, vector<32x32xbf16>
    %cst = arith.constant dense<0.000000e+00> : vector<32x32xf32>
    %2 = tpu.matmul %0, %1, %cst {dimension_numbers = #tpu.dot_dimension_numbers<[1], [0], [0], [1], [0, 0, 1, 1], [], []>} : vector<32x32xbf16>, vector<32x32xbf16>, vector<32x32xf32> -> vector<32x32xf32>
    %c0_3 = arith.constant 0 : index
    %c0_4 = arith.constant 0 : index
    %3 = vector.load %arg3[%c0_3, %c0_4] : memref<1x32xf32, #tpu.memory_space<vmem>>, vector<1x32xf32>
    %4 = vector.broadcast %3 : vector<1x32xf32> to vector<32x32xf32>
    %5 = arith.addf %2, %4 : vector<32x32xf32>
    %6 = arith.truncf %5 : vector<32x32xf32> to vector<32x32xbf16>
    %c0_5 = arith.constant 0 : index
    %c0_6 = arith.constant 0 : index
    %7 = vector.load %arg4[%c0_5, %c0_6] : memref<32x32xbf16, #tpu.memory_space<vmem>>, vector<32x32xbf16>
    tpu.vector_store %arg4[%c0_5, %c0_6], %6 {strides = array<i32>} : memref<32x32xbf16, #tpu.memory_space<vmem>>, vector<32x32xbf16>,
    return
  }
  func.func @transform_0(%arg0: i32) -> (i32, i32) {
    %c0_i32 = arith.constant 0 : i32
    %c0_i32_0 = arith.constant 0 : i32
    return %arg0, %c0_i32 : i32, i32
  }
  func.func @transform_1(%arg0: i32) -> (i32, i32) {
    %c0_i32 = arith.constant 0 : i32
    %c0_i32_0 = arith.constant 0 : i32
    %c0_i32_1 = arith.constant 0 : i32
    return %c0_i32, %c0_i32_0 : i32, i32
  }
  func.func @transform_2(%arg0: i32) -> (i32, i32) {
    %c0_i32 = arith.constant 0 : i32
    %c0_i32_0 = arith.constant 0 : i32
    %c0_i32_1 = arith.constant 0 : i32
    return %c0_i32, %c0_i32_0 : i32, i32
  }
  func.func @transform_3(%arg0: i32) -> (i32, i32) {
    %c0_i32 = arith.constant 0 : i32
    %c0_i32_0 = arith.constant 0 : i32
    return %arg0, %c0_i32 : i32, i32
  }
}

</mosaic_0001>

<bundles_post_ra>
// kernel: tpu_custom_call.1
= control target key start
LH: loop header
LB: loop body
LE: loop exit
PB: predicated region body
PF: predicated region fallthrough
CT: control target
= control target key end

     0   :  { %8 = vsyncpa [#allocation3], 0  ;;  %s328_s0 = inlined_call_operand.hbm [shape: bf16[32,32], index: 0, kind: input, shape index: {}]   ;;  %s329_s1 = inlined_call_operand.hbm [shape: bf16[32,32], index: 1, kind: input, shape index: {}]   ;;  %s330_s2 = inlined_call_operand.vmem [shape: f32[1,32], index: 2, kind: input, shape index: {}]   ;;  %s331_s3 = inlined_call_operand.hbm [shape: bf16[32,32], index: 3, kind: output, shape index: {}]  }
   0x1   :  { %9 = vsyncpa [#allocation6], 0 }
   0x2   :  { %10 = vsyncpa [#allocation4], 0  ;;  %s278_s12 = smov [#allocation2]  }
   0x3   :  { %s16_s13 = sshll.u32 %s278_s12, 4  ;;  %s17_s13 = int_to_ptr.vmem [resolvable:$true] %s16_s13 }
   0x4   :  { %s220_s14 = scalar_lea.vmem %s17_s13, 256  ;;  %p225_p1 = scmp.lt.s32.totalorder %s17_s13, %s17_s13 }
   0x5   :  { %p221_p0 = scmp.ne.s32.totalorder %s17_s13, %s220_s14  ;;  %p226_p2 = scmp.lt.s32.totalorder %s220_s14, %s220_s14 }
   0x7   :  { %p227_p3 = por %p226_p2, %p225_p1 }
   0x9   :  { %p228_p4 = pnand %p227_p3, %p221_p0 }
   0xb   :  { %231 = shalt.err (!%p228_p4)
}
   0xc   :  { %s279_s15 = smov 64   ;;  %s280_s16 = smov 4  }
   0xd   :  { %22 = dma.hbm_to_vmem [thread:$0]  %s328_s0, 256, %s17_s13, [#allocation3], %s279_s15, %s279_s15, %s280_s16  }
   0xe   :  { %s281_s19 = smov [#allocation5]  }
   0xf   :  { %s28_s20 = sshll.u32 %s281_s19, 4  ;;  %s29_s20 = int_to_ptr.vmem [resolvable:$true] %s28_s20 }
  0x10   :  { %s240_s21 = scalar_lea.vmem %s29_s20, 256  ;;  %p245_p6 = scmp.lt.s32.totalorder %s29_s20, %s29_s20 }
  0x11   :  { %p241_p5 = scmp.ne.s32.totalorder %s29_s20, %s240_s21  ;;  %p246_p7 = scmp.lt.s32.totalorder %s240_s21, %s240_s21 }
  0x13   :  { %p247_p8 = por %p246_p7, %p245_p6 }
  0x15   :  { %p248_p9 = pnand %p247_p8, %p241_p5 }
  0x17   :  { %251 = shalt.err (!%p248_p9)
}
  0x18   :  { %34 = dma.hbm_to_vmem [thread:$0]  %s329_s1, 256, %s29_s20, [#allocation6], %s279_s15, %s279_s15, %s280_s16  }
  0x19   :  { %272 = dma.done.wait [#allocation3], 256  }
  0x1a   :  { %273 = vsyncadd [#allocation3], 4294967040 }
  0x1b   :  { %274 = dma.done.wait [#allocation6], 256  }
  0x1c   :  { %275 = vsyncadd [#allocation6], 4294967040  ;;  %v208_v0 = vld [vmem:[#allocation5 + $0x8] sm:$0xff]   ;;  %v209_v1 = vld [vmem:[#allocation5] sm:$0xff]   ;;  %vm81_vm0 = vcmask 261120   ;;  %vm153_vm1 = vcmask 257024  }
  0x1d   :  { %195 = vmatprep.subr.bf16.mxu0 %v208_v0  ;;  %v210_v2 = vld [vmem:[#allocation2] sm:$0xff]   ;;  %v211_v3 = vld [vmem:[#allocation2 + $0x8] sm:$0xff]   ;;  %s282_s1 = smov [#allocation7]  }
  0x1e   :  { %196 = vmatpush3.bf16.msra.mxu0 %v208_v0  ;;  %199 = vmatprep.mubr.msk.bf16.mxu0 %vm81_vm0, %v210_v2  ;;  %v176_v4 = vld [vmem:[%s330_s2] ss:$0 sm:$0xff]  ;;  %s163_s25 = sshll.u32 %s282_s1, 4  ;;  %s164_s25 = int_to_ptr.vmem [resolvable:$true] %s163_s25 }
  0x1f   :  { %197 = vmatprep.subr.bf16.mxu0 %v209_v1  ;;  %s252_s2 = scalar_lea.vmem %s164_s25, 256  ;;  %p257_p11 = scmp.lt.s32.totalorder %s164_s25, %s164_s25 }
  0x20   :  { %p253_p10 = scmp.ne.s32.totalorder %s164_s25, %s252_s2  ;;  %p258_p12 = scmp.lt.s32.totalorder %s252_s2, %s252_s2 }
  0x22   :  { %198 = vmatpush3.bf16.msra.mxu0 %v209_v1  ;;  %p259_p13 = por %p258_p12, %p257_p11 }
  0x24   :  { %p260_p0 = pnand %p259_p13, %p253_p10 }
  0x25   :  { %200 = vmatmul.mubr.msk.bf16.vlgmr.msra.gmra.mxu0 %vm81_vm0, %v211_v3 }
  0xe5   :  { %v201_v5 = vpop.f32.mrf.mxu0 }
  0xe6   :  { %v131_v6 = vadd.f32 %v201_v5, %v176_v4 }
  0xe7   :  { %v122_v7 = vpop.f32.mrf.mxu0 }
  0xe8   :  { %v189_v8 = vpack.c.bf16 %v131_v6, %v131_v6  ;;  %v123_v9 = vadd.f32 %v176_v4, %v122_v7 }
  0xe9   :  { %v202_v10 = vpop.f32.mrf.mxu0 }
  0xea   :  { %156 = vst.msk [vmem:[#allocation7 + $0x8] sm:$0xf] %vm153_vm1, %v189_v8  ;;  %v187_v11 = vpack.c.bf16 %v123_v9, %v123_v9  ;;  %v134_v12 = vadd.f32 %v202_v10, %v176_v4 }
  0xeb   :  { %v125_v13 = vpop.f32.mrf.mxu0 }
  0xec   :  { %154 = vst.msk [vmem:[#allocation7] sm:$0xf] %vm153_vm1, %v187_v11  ;;  %v190_v14 = vpack.c.bf16 %v134_v12, %v134_v12  ;;  %v126_v15 = vadd.f32 %v176_v4, %v125_v13 }
  0xee   :  { %157 = vst.msk [vmem:[#allocation7 + $0xc] sm:$0xf] %vm153_vm1, %v190_v14  ;;  %v188_v16 = vpack.c.bf16 %v126_v15, %v126_v15 }
  0xf0   :  { %155 = vst.msk [vmem:[#allocation7 + $0x4] sm:$0xf] %vm153_vm1, %v188_v16 }
  0xf1   :  { %263 = shalt.err (!%p260_p0)
}
  0xf2   :  { %169 = dma.vmem_to_hbm [thread:$0]  %s164_s25, 256, %s331_s3, [#allocation4], %s279_s15, %s279_s15, %s280_s16  }
  0xf3   :  { %276 = dma.done.wait [#allocation4], 256  }
  0xf4   :  { %277 = vsyncadd [#allocation4], 4294967040 }
  0xf5   :  { %173 = vsyncpa [#allocation3], 1 }
  0xf6   :  { %174 = vsyncpa [#allocation6], 1 }
  0xf7   :  { %175 = vsyncpa [#allocation4], 1 }

</bundles_post_ra>
